<compile_context>
chip_gen: v5e
topology: v5e:2x2
jax: 0.10.0
libtpu: 0.0.40
codegen_flags: <defaults>
</compile_context>

<pallas_src>
import functools
import math

import jax
import jax.numpy as jnp
import numpy as np
from jax.experimental import pallas as pl
from jax.experimental.pallas import tpu as pltpu


def _layer_norm(v, gamma, beta, eps=1e-5):
    mu = jnp.mean(v, axis=-1, keepdims=True)
    var = jnp.mean((v - mu) ** 2, axis=-1, keepdims=True)
    return (v - mu) * jax.lax.rsqrt(var + eps) * gamma + beta


def _pick_heads_per_group(nhead, head_dim):
    """Group heads so one context store covers a 128-lane-aligned span when possible."""
    if head_dim % 128 == 0:
        return 1
    if 128 % head_dim == 0 and nhead % (128 // head_dim) == 0:
        return 128 // head_dim
    return nhead  # single group covering the whole model dim (small-D case)


def _encoder_layer_kernel(
    x_ref,
    wq_ref, wkv_ref, bq_ref, bkv_ref,
    wo_ref, bo_ref,
    w1_ref, b1_ref, w2_ref, b2_ref,
    g1_ref, be1_ref, g2_ref, be2_ref,
    o_ref,
    x2_scr, k_scr, v_scr, q_scr, ctx_scr,
    *, nhead, head_dim, heads_per_group, tq, exp_dtype,
):
    D = nhead * head_dim
    gw = heads_per_group * head_dim          # group width (multiple of 128 when >1 group)
    n_groups = nhead // heads_per_group
    bf16 = jnp.bfloat16
    qi = pl.program_id(1)

    # --- per-batch prologue (qi == 0): LN1 over full sequence + fused K|V proj ---
    @pl.when(qi == 0)
    def _():
        xf = x_ref[0]                                           # (S, D) f32
        x2f = _layer_norm(xf, g1_ref[0], be1_ref[0]).astype(bf16)
        x2_scr[...] = x2f                                       # cache LN1 output
        kv = jnp.dot(x2f, wkv_ref[...],                         # fused K|V projection
                     preferred_element_type=jnp.float32) + bkv_ref[0]
        k_scr[...] = kv[:, :D].astype(bf16)
        v_scr[...] = kv[:, D:].astype(bf16)

    # --- Q projection for this row tile (1/sqrt(head_dim) folded into wq/bq) -----
    row0 = pl.multiple_of(qi * tq, tq)
    x2t = x2_scr[pl.ds(row0, tq), :]                            # (TQ, D) bf16
    q_scr[...] = (jnp.dot(x2t, wq_ref[...],
                          preferred_element_type=jnp.float32)
                  + bq_ref[0]).astype(bf16)

    # --- attention: per-head softmax, head-group context stored lane-aligned -----
    def attend_group(off):
        qg = q_scr[:, pl.ds(off, gw)]                           # (TQ, gw) bf16
        kg = k_scr[:, pl.ds(off, gw)]                           # (S,  gw) bf16
        vg = v_scr[:, pl.ds(off, gw)]                           # (S,  gw) bf16
        parts = []
        for j in range(heads_per_group):                        # tiny static unroll
            lo = j * head_dim
            qh = qg[:, lo:lo + head_dim]
            kh = kg[:, lo:lo + head_dim]
            vh = vg[:, lo:lo + head_dim]
            # contract the head dim of both operands -> no kh.T materialization
            s = jax.lax.dot_general(qh, kh, (((1,), (1,)), ((), ())),
                                    preferred_element_type=jnp.float32)  # (TQ, S)
            s = s - jnp.max(s, axis=-1, keepdims=True)
            p = jnp.exp(s.astype(exp_dtype))                    # bf16 exp on v6e/v7x
            l = jnp.sum(p.astype(jnp.float32), axis=-1, keepdims=True)
            ctx = jnp.dot(p.astype(bf16), vh,
                          preferred_element_type=jnp.float32)   # (TQ, hd) f32
            ctx = ctx * pl.reciprocal(l, approx=True)           # normalize after PV
            parts.append(ctx.astype(bf16))
        grp = parts[0] if len(parts) == 1 else jnp.concatenate(parts, axis=-1)
        ctx_scr[:, pl.ds(off, gw)] = grp                        # one lane-aligned store

    if n_groups == 1:
        attend_group(0)
    else:
        def group_body(gi, carry):
            attend_group(pl.multiple_of(gi * gw, gw))
            return carry
        jax.lax.fori_loop(0, n_groups, group_body, 0)

    # --- single full-depth output projection over the concatenated heads ---------
    attn = jnp.dot(ctx_scr[...], wo_ref[...],
                   preferred_element_type=jnp.float32) + bo_ref[0]

    xt = x_ref[0, pl.ds(row0, tq), :]                           # (TQ, D) f32
    src = xt + attn                                             # residual (dropout1 = id)

    # --- pre-norm 2 + feed-forward -------------------------------------------------
    x3 = _layer_norm(src, g2_ref[0], be2_ref[0]).astype(bf16)
    hdn = jnp.maximum(
        jnp.dot(x3, w1_ref[...], preferred_element_type=jnp.float32) + b1_ref[0],
        0.0).astype(bf16)                                       # relu
    ff = jnp.dot(hdn, w2_ref[...], preferred_element_type=jnp.float32) + b2_ref[0]

    o_ref[0] = (src + ff).astype(o_ref.dtype)                   # residual (dropout2 = id)


def _device_kind():
    try:
        return jax.devices()[0].device_kind.lower()
    except Exception:
        return ""


def prepare_params(params, *, nhead):
    """One-time weight packing: K|V concat, bf16 casts, softmax scale folded into Wq/bq."""
    d_model = params["wq"].shape[0]
    head_dim = d_model // nhead
    scale = 1.0 / math.sqrt(head_dim)
    bf16 = jnp.bfloat16
    return {
        "wq": (params["wq"] * scale).astype(bf16),
        "bq": params["bq"] * scale,
        "wkv": jnp.concatenate([params["wk"], params["wv"]], axis=1).astype(bf16),
        "bkv": jnp.concatenate([params["bk"], params["bv"]], axis=1),
        "wo": params["wo"].astype(bf16),
        "bo": params["bo"],
        "w1": params["w1"].astype(bf16),
        "b1": params["b1"],
        "w2": params["w2"].astype(bf16),
        "b2": params["b2"],
        "g1": params["g1"], "be1": params["be1"],
        "g2": params["g2"], "be2": params["be2"],
    }


def transformer_encoder_layer_residual_batch_first(x_bsd, prepped, *, nhead):
    """x_bsd: (B, S, D) float32, prepped from prepare_params(). Returns (B, S, D)."""
    B, S, D = x_bsd.shape
    head_dim = D // nhead

    kind = _device_kind()
    is_v7 = ("v7" in kind) or ("7x" in kind)
    # bf16 EUP exists on v6e/v7x; keep f32 softmax exp on v4/v5 parts.
    exp_dtype = jnp.bfloat16 if (is_v7 or "v6" in kind) else jnp.float32
    # v7x has 64 MiB physical VMEM; v4/v5e/v5p/v6e have 128 MiB.
    vmem_limit = (56 if is_v7 else 96) * 1024 * 1024

    # query-row tile: as large as the VMEM budget allows (amortizes per-step overhead)
    max_tq = 256 if is_v7 else 512
    TQ = S
    for cand in (512, 256, 128):
        if cand <= max_tq and S % cand == 0:
            TQ = cand
            break
    NQ = S // TQ

    heads_per_group = _pick_heads_per_group(nhead, head_dim)

    bf16 = jnp.bfloat16
    resident = pl.BlockSpec(memory_space=pltpu.MemorySpace.VMEM)  # grid-invariant weights
    in_specs = [pl.BlockSpec((1, S, D), lambda b, q: (b, 0, 0))] + [resident] * 14

    kernel = functools.partial(
        _encoder_layer_kernel,
        nhead=nhead, head_dim=head_dim, heads_per_group=heads_per_group,
        tq=TQ, exp_dtype=exp_dtype)

    out = pl.pallas_call(
        kernel,
        out_shape=jax.ShapeDtypeStruct((B, S, D), x_bsd.dtype),
        grid_spec=pltpu.PrefetchScalarGridSpec(
            num_scalar_prefetch=0,
            grid=(B, NQ),
            in_specs=in_specs,
            out_specs=pl.BlockSpec((1, TQ, D), lambda b, q: (b, q, 0)),
            scratch_shapes=[
                pltpu.VMEM((S, D), bf16),     # LN1(x) cache (whole sequence, per b)
                pltpu.VMEM((S, D), bf16),     # K
                pltpu.VMEM((S, D), bf16),     # V
                pltpu.VMEM((TQ, D), bf16),    # Q tile
                pltpu.VMEM((TQ, D), bf16),    # concatenated per-head context
            ],
        ),
        compiler_params=pltpu.CompilerParams(
            # TODO(synk): hoist K/V projection into a separate pallas_call so the q axis
            # can also be "parallel" (core-parallel on v7x's 2 TensorCores).
            dimension_semantics=("parallel", "arbitrary"),
            vmem_limit_bytes=vmem_limit,
        ),
    )(
        x_bsd,
        prepped["wq"], prepped["wkv"], prepped["bq"], prepped["bkv"],
        prepped["wo"], prepped["bo"],
        prepped["w1"], prepped["b1"], prepped["w2"], prepped["b2"],
        prepped["g1"], prepped["be1"], prepped["g2"], prepped["be2"],
    )
    return out


def transformer_encoder_layer_residual(src, prepped, *, nhead):
    """src: (S, B, D) float32 (PyTorch seq-first layout). Returns (S, B, D)."""
    x_bsd = jnp.transpose(src, (1, 0, 2))
    out = transformer_encoder_layer_residual_batch_first(x_bsd, prepped, nhead=nhead)
    return jnp.transpose(out, (1, 0, 2))


def _reference(src, params, *, nhead):
    """Pure-JAX f32 reference reproducing the PyTorch forward (eval mode, no masks)."""
    S, B, D = src.shape
    hd = D // nhead

    def ln(v, g, b):
        mu = jnp.mean(v, -1, keepdims=True)
        var = jnp.mean((v - mu) ** 2, -1, keepdims=True)
        return (v - mu) / jnp.sqrt(var + 1e-5) * g + b

    x2 = ln(src, params["g1"][0], params["be1"][0])
    q = x2 @ params["wq"] + params["bq"][0]
    k = x2 @ params["wk"] + params["bk"][0]
    v = x2 @ params["wv"] + params["bv"][0]

    def split(t):  # (S,B,D) -> (B,nh,S,hd)
        return jnp.transpose(t.reshape(S, B, nhead, hd), (1, 2, 0, 3))

    qh, kh, vh = split(q) / math.sqrt(hd), split(k), split(v)
    sc = jnp.einsum("bhqd,bhkd->bhqk", qh, kh)
    p = jax.nn.softmax(sc, axis=-1)
    oh = jnp.einsum("bhqk,bhkd->bhqd", p, vh)                 # (B,nh,S,hd)
    concat = jnp.transpose(oh, (2, 0, 1, 3)).reshape(S, B, D)
    attn = concat @ params["wo"] + params["bo"][0]
    src1 = src + attn
    x3 = ln(src1, params["g2"][0], params["be2"][0])
    ff = jnp.maximum(x3 @ params["w1"] + params["b1"][0], 0.0) @ params["w2"] + params["b2"][0]
    return src1 + ff


def make_params(key, d_model, nhead, dim_feedforward):
    ks = jax.random.split(key, 10)
    sd = 0.02
    n = jax.random.normal
    # torch packs in_proj as (3D, D); keep q/k/v separate, pre-transposed to (D, D)
    return {
        "wq": n(ks[0], (d_model, d_model), jnp.float32) * sd,
        "wk": n(ks[1], (d_model, d_model), jnp.float32) * sd,
        "wv": n(ks[2], (d_model, d_model), jnp.float32) * sd,
        "bq": n(ks[3], (1, d_model), jnp.float32) * sd,
        "bk": n(ks[4], (1, d_model), jnp.float32) * sd,
        "bv": n(ks[5], (1, d_model), jnp.float32) * sd,
        "wo": n(ks[6], (d_model, d_model), jnp.float32) * sd,
        "bo": n(ks[7], (1, d_model), jnp.float32) * sd,
        "w1": n(ks[8], (d_model, dim_feedforward), jnp.float32) * sd,
        "b1": jnp.zeros((1, dim_feedforward), jnp.float32),
        "w2": n(ks[9], (dim_feedforward, d_model), jnp.float32) * sd,
        "b2": jnp.zeros((1, d_model), jnp.float32),
        "g1": jnp.ones((1, d_model), jnp.float32),
        "be1": jnp.zeros((1, d_model), jnp.float32),
        "g2": jnp.ones((1, d_model), jnp.float32),
        "be2": jnp.zeros((1, d_model), jnp.float32),
    }


if __name__ == "__main__":
    S, B, D, NHEAD, FF = 8, 2, 32, 4, 64
    key = jax.random.PRNGKey(0)
    kx, kp = jax.random.split(key)
    src = jax.random.normal(kx, (S, B, D), jnp.float32)
    params = make_params(kp, D, NHEAD, FF)
    prepped = prepare_params(params, nhead=NHEAD)   # one-time weight packing / casting

    out = transformer_encoder_layer_residual(src, prepped, nhead=NHEAD)
    out = jax.block_until_ready(out)

    ref = jax.block_until_ready(_reference(src, params, nhead=NHEAD))
    # bf16 matmul (+ bf16 softmax exp on v6e/v7x) path -> looser tolerance than pure f32
    np.testing.assert_allclose(np.asarray(out), np.asarray(ref), rtol=2e-2, atol=2e-2)

    print("KERNEL_OK")
</pallas_src>

<mosaic_0001>
module attributes {stable_mosaic.version = 11 : i64} {
  func.func @_encoder_layer_kernel(%arg0: i32, %arg1: i32, %arg2: memref<1x8x32xf32, #tpu.memory_space<vmem>>, %arg3: memref<32x32xbf16, #tpu.memory_space<vmem>>, %arg4: memref<32x64xbf16, #tpu.memory_space<vmem>>, %arg5: memref<1x32xf32, #tpu.memory_space<vmem>>, %arg6: memref<1x64xf32, #tpu.memory_space<vmem>>, %arg7: memref<32x32xbf16, #tpu.memory_space<vmem>>, %arg8: memref<1x32xf32, #tpu.memory_space<vmem>>, %arg9: memref<32x64xbf16, #tpu.memory_space<vmem>>, %arg10: memref<1x64xf32, #tpu.memory_space<vmem>>, %arg11: memref<64x32xbf16, #tpu.memory_space<vmem>>, %arg12: memref<1x32xf32, #tpu.memory_space<vmem>>, %arg13: memref<1x32xf32, #tpu.memory_space<vmem>>, %arg14: memref<1x32xf32, #tpu.memory_space<vmem>>, %arg15: memref<1x32xf32, #tpu.memory_space<vmem>>, %arg16: memref<1x32xf32, #tpu.memory_space<vmem>>, %arg17: memref<1x8x32xf32, #tpu.memory_space<vmem>>, %arg18: memref<8x32xbf16, #tpu.memory_space<vmem>>, %arg19: memref<8x32xbf16, #tpu.memory_space<vmem>>, %arg20: memref<8x32xbf16, #tpu.memory_space<vmem>>, %arg21: memref<8x32xbf16, #tpu.memory_space<vmem>>, %arg22: memref<8x32xbf16, #tpu.memory_space<vmem>>) attributes {dimension_semantics = [#tpu.dimension_semantics<parallel>, #tpu.dimension_semantics<arbitrary>], iteration_bounds = array<i64: 2, 1>, scalar_prefetch = 0 : i64, scratch_operands = 5 : i64, tpu.core_type = #tpu.core_type<tc>, window_params = [{transform_indices = @transform_0, window_bounds = array<i64: 1, 8, 32>}, {pipeline_mode = #tpu.pipeline_mode<synchronous>, transform_indices = @transform_1, window_bounds = array<i64: 32, 32>}, {pipeline_mode = #tpu.pipeline_mode<synchronous>, transform_indices = @transform_2, window_bounds = array<i64: 32, 64>}, {pipeline_mode = #tpu.pipeline_mode<synchronous>, transform_indices = @transform_3, window_bounds = array<i64: 1, 32>}, {pipeline_mode = #tpu.pipeline_mode<synchronous>, transform_indices = @transform_4, window_bounds = array<i64: 1, 64>}, {pipeline_mode = #tpu.pipeline_mode<synchronous>, transform_indices = @transform_5, window_bounds = array<i64: 32, 32>}, {pipeline_mode = #tpu.pipeline_mode<synchronous>, transform_indices = @transform_6, window_bounds = array<i64: 1, 32>}, {pipeline_mode = #tpu.pipeline_mode<synchronous>, transform_indices = @transform_7, window_bounds = array<i64: 32, 64>}, {pipeline_mode = #tpu.pipeline_mode<synchronous>, transform_indices = @transform_8, window_bounds = array<i64: 1, 64>}, {pipeline_mode = #tpu.pipeline_mode<synchronous>, transform_indices = @transform_9, window_bounds = array<i64: 64, 32>}, {pipeline_mode = #tpu.pipeline_mode<synchronous>, transform_indices = @transform_10, window_bounds = array<i64: 1, 32>}, {pipeline_mode = #tpu.pipeline_mode<synchronous>, transform_indices = @transform_11, window_bounds = array<i64: 1, 32>}, {pipeline_mode = #tpu.pipeline_mode<synchronous>, transform_indices = @transform_12, window_bounds = array<i64: 1, 32>}, {pipeline_mode = #tpu.pipeline_mode<synchronous>, transform_indices = @transform_13, window_bounds = array<i64: 1, 32>}, {pipeline_mode = #tpu.pipeline_mode<synchronous>, transform_indices = @transform_14, window_bounds = array<i64: 1, 32>}, {transform_indices = @transform_15, window_bounds = array<i64: 1, 8, 32>}]} {
    %c0_i32 = arith.constant 0 : i32
    %0 = arith.cmpi eq, %arg1, %c0_i32 : i32
    %1 = arith.extui %0 : i1 to i32
    %c0_i32_0 = arith.constant 0 : i32
    %2 = arith.cmpi ne, %1, %c0_i32_0 : i32
    scf.if %2 {
      %c0_63 = arith.constant 0 : index
      %c0_64 = arith.constant 0 : index
      %c0_65 = arith.constant 0 : index
      %151 = vector.load %arg2[%c0_63, %c0_64, %c0_65] : memref<1x8x32xf32, #tpu.memory_space<vmem>>, vector<1x8x32xf32>
      %152 = vector.shape_cast %151 : vector<1x8x32xf32> to vector<8x32xf32>
      %c0_66 = arith.constant 0 : index
      %c0_67 = arith.constant 0 : index
      %153 = vector.load %arg13[%c0_66, %c0_67] : memref<1x32xf32, #tpu.memory_space<vmem>>, vector<1x32xf32>
      %154 = vector.shape_cast %153 : vector<1x32xf32> to vector<32xf32>
      %c0_68 = arith.constant 0 : index
      %c0_69 = arith.constant 0 : index
      %155 = vector.load %arg14[%c0_68, %c0_69] : memref<1x32xf32, #tpu.memory_space<vmem>>, vector<1x32xf32>
      %156 = vector.shape_cast %155 : vector<1x32xf32> to vector<32xf32>
      %cst_70 = arith.constant dense<0.000000e+00> : vector<8xf32>
      %157 = vector.multi_reduction <add>, %152, %cst_70 [1] : vector<8x32xf32> to vector<8xf32>
      %158 = vector.shape_cast %157 : vector<8xf32> to vector<8x1xf32>
      %cst_71 = arith.constant 3.200000e+01 : f32
      %159 = vector.broadcast %cst_71 : f32 to vector<8x1xf32>
      %160 = arith.divf %158, %159 : vector<8x1xf32>
      %161 = vector.broadcast %160 : vector<8x1xf32> to vector<8x32xf32>
      %162 = arith.subf %152, %161 : vector<8x32xf32>
      %163 = arith.mulf %162, %162 : vector<8x32xf32>
      %cst_72 = arith.constant dense<0.000000e+00> : vector<8xf32>
      %164 = vector.multi_reduction <add>, %163, %cst_72 [1] : vector<8x32xf32> to vector<8xf32>
      %165 = vector.shape_cast %164 : vector<8xf32> to vector<8x1xf32>
      %cst_73 = arith.constant 3.200000e+01 : f32
      %166 = vector.broadcast %cst_73 : f32 to vector<8x1xf32>
      %167 = arith.divf %165, %166 : vector<8x1xf32>
      %168 = vector.broadcast %160 : vector<8x1xf32> to vector<8x32xf32>
      %169 = arith.subf %152, %168 : vector<8x32xf32>
      %cst_74 = arith.constant 9.99999974E-6 : f32
      %170 = vector.broadcast %cst_74 : f32 to vector<8x1xf32>
      %171 = arith.addf %167, %170 : vector<8x1xf32>
      %172 = math.rsqrt %171 : vector<8x1xf32>
      %173 = vector.broadcast %172 : vector<8x1xf32> to vector<8x32xf32>
      %174 = arith.mulf %169, %173 : vector<8x32xf32>
      %175 = vector.shape_cast %154 : vector<32xf32> to vector<1x32xf32>
      %176 = vector.broadcast %175 : vector<1x32xf32> to vector<8x32xf32>
      %177 = arith.mulf %174, %176 : vector<8x32xf32>
      %178 = vector.shape_cast %156 : vector<32xf32> to vector<1x32xf32>
      %179 = vector.broadcast %178 : vector<1x32xf32> to vector<8x32xf32>
      %180 = arith.addf %177, %179 : vector<8x32xf32>
      %181 = arith.truncf %180 : vector<8x32xf32> to vector<8x32xbf16>
      %c0_75 = arith.constant 0 : index
      %c0_76 = arith.constant 0 : index
      %182 = vector.load %arg18[%c0_75, %c0_76] : memref<8x32xbf16, #tpu.memory_space<vmem>>, vector<8x32xbf16>
      tpu.vector_store %arg18[%c0_75, %c0_76], %181 {strides = array<i32>} : memref<8x32xbf16, #tpu.memory_space<vmem>>, vector<8x32xbf16>,
      %c0_77 = arith.constant 0 : index
      %c0_78 = arith.constant 0 : index
      %183 = vector.load %arg4[%c0_77, %c0_78] : memref<32x64xbf16, #tpu.memory_space<vmem>>, vector<32x64xbf16>
      %cst_79 = arith.constant dense<0.000000e+00> : vector<8x64xf32>
      %184 = tpu.matmul %181, %183, %cst_79 {dimension_numbers = #tpu.dot_dimension_numbers<[1], [0], [0], [1], [0, 0, 1, 1], [], []>} : vector<8x32xbf16>, vector<32x64xbf16>, vector<8x64xf32> -> vector<8x64xf32>
      %c0_80 = arith.constant 0 : index
      %c0_81 = arith.constant 0 : index
      %185 = vector.load %arg6[%c0_80, %c0_81] : memref<1x64xf32, #tpu.memory_space<vmem>>, vector<1x64xf32>
      %186 = vector.shape_cast %185 : vector<1x64xf32> to vector<64xf32>
      %187 = vector.shape_cast %186 : vector<64xf32> to vector<1x64xf32>
      %188 = vector.broadcast %187 : vector<1x64xf32> to vector<8x64xf32>
      %189 = arith.addf %184, %188 : vector<8x64xf32>
      %190 = vector.extract_strided_slice %189 {offsets = [0, 0], sizes = [8, 32], strides = [1, 1]} : vector<8x64xf32> to vector<8x32xf32>
      %191 = arith.truncf %190 : vector<8x32xf32> to vector<8x32xbf16>
      %c0_82 = arith.constant 0 : index
      %c0_83 = arith.constant 0 : index
      %192 = vector.load %arg19[%c0_82, %c0_83] : memref<8x32xbf16, #tpu.memory_space<vmem>>, vector<8x32xbf16>
      tpu.vector_store %arg19[%c0_82, %c0_83], %191 {strides = array<i32>} : memref<8x32xbf16, #tpu.memory_space<vmem>>, vector<8x32xbf16>,
      %193 = vector.extract_strided_slice %189 {offsets = [0, 32], sizes = [8, 32], strides = [1, 1]} : vector<8x64xf32> to vector<8x32xf32>
      %194 = arith.truncf %193 : vector<8x32xf32> to vector<8x32xbf16>
      %c0_84 = arith.constant 0 : index
      %c0_85 = arith.constant 0 : index
      %195 = vector.load %arg20[%c0_84, %c0_85] : memref<8x32xbf16, #tpu.memory_space<vmem>>, vector<8x32xbf16>
      tpu.vector_store %arg20[%c0_84, %c0_85], %194 {strides = array<i32>} : memref<8x32xbf16, #tpu.memory_space<vmem>>, vector<8x32xbf16>,
    } else {
    }
    %c8_i32 = arith.constant 8 : i32
    %3 = arith.muli %arg1, %c8_i32 : i32
    %4 = tpu.assume_multiple %3, 8 : i32
    %5 = arith.index_cast %4 : i32 to index
    %c0 = arith.constant 0 : index
    %6 = vector.load %arg18[%5, %c0] : memref<8x32xbf16, #tpu.memory_space<vmem>>, vector<8x32xbf16>
    %c0_1 = arith.constant 0 : index
    %c0_2 = arith.constant 0 : index
    %7 = vector.load %arg3[%c0_1, %c0_2] : memref<32x32xbf16, #tpu.memory_space<vmem>>, vector<32x32xbf16>
    %cst = arith.constant dense<0.000000e+00> : vector<8x32xf32>
    %8 = tpu.matmul %6, %7, %cst {dimension_numbers = #tpu.dot_dimension_numbers<[1], [0], [0], [1], [0, 0, 1, 1], [], []>} : vector<8x32xbf16>, vector<32x32xbf16>, vector<8x32xf32> -> vector<8x32xf32>
    %c0_3 = arith.constant 0 : index
    %c0_4 = arith.constant 0 : index
    %9 = vector.load %arg5[%c0_3, %c0_4] : memref<1x32xf32, #tpu.memory_space<vmem>>, vector<1x32xf32>
    %10 = vector.shape_cast %9 : vector<1x32xf32> to vector<32xf32>
    %11 = vector.shape_cast %10 : vector<32xf32> to vector<1x32xf32>
    %12 = vector.broadcast %11 : vector<1x32xf32> to vector<8x32xf32>
    %13 = arith.addf %8, %12 : vector<8x32xf32>
    %14 = arith.truncf %13 : vector<8x32xf32> to vector<8x32xbf16>
    %c0_5 = arith.constant 0 : index
    %c0_6 = arith.constant 0 : index
    %15 = vector.load %arg21[%c0_5, %c0_6] : memref<8x32xbf16, #tpu.memory_space<vmem>>, vector<8x32xbf16>
    tpu.vector_store %arg21[%c0_5, %c0_6], %14 {strides = array<i32>} : memref<8x32xbf16, #tpu.memory_space<vmem>>, vector<8x32xbf16>,
    %c0_7 = arith.constant 0 : index
    %c0_8 = arith.constant 0 : index
    %16 = vector.load %arg21[%c0_7, %c0_8] : memref<8x32xbf16, #tpu.memory_space<vmem>>, vector<8x32xbf16>
    %c0_9 = arith.constant 0 : index
    %c0_10 = arith.constant 0 : index
    %17 = vector.load %arg19[%c0_9, %c0_10] : memref<8x32xbf16, #tpu.memory_space<vmem>>, vector<8x32xbf16>
    %c0_11 = arith.constant 0 : index
    %c0_12 = arith.constant 0 : index
    %18 = vector.load %arg20[%c0_11, %c0_12] : memref<8x32xbf16, #tpu.memory_space<vmem>>, vector<8x32xbf16>
    %19 = vector.extract_strided_slice %16 {offsets = [0, 0], sizes = [8, 8], strides = [1, 1]} : vector<8x32xbf16> to vector<8x8xbf16>
    %20 = vector.extract_strided_slice %17 {offsets = [0, 0], sizes = [8, 8], strides = [1, 1]} : vector<8x32xbf16> to vector<8x8xbf16>
    %21 = vector.extract_strided_slice %18 {offsets = [0, 0], sizes = [8, 8], strides = [1, 1]} : vector<8x32xbf16> to vector<8x8xbf16>
    %cst_13 = arith.constant dense<0.000000e+00> : vector<8x8xf32>
    %22 = tpu.matmul %19, %20, %cst_13 {dimension_numbers = #tpu.dot_dimension_numbers<[1], [1], [0], [0], [0, 0, 1, 0], [], []>} : vector<8x8xbf16>, vector<8x8xbf16>, vector<8x8xf32> -> vector<8x8xf32>
    %cst_14 = arith.constant dense<0xFF800000> : vector<8xf32>
    %23 = vector.multi_reduction <maximumf>, %22, %cst_14 [1] : vector<8x8xf32> to vector<8xf32>
    %24 = vector.shape_cast %23 : vector<8xf32> to vector<8x1xf32>
    %25 = vector.broadcast %24 : vector<8x1xf32> to vector<8x8xf32>
    %26 = arith.subf %22, %25 : vector<8x8xf32>
    %27 = math.exp %26 : vector<8x8xf32>
    %cst_15 = arith.constant dense<0.000000e+00> : vector<8xf32>
    %28 = vector.multi_reduction <add>, %27, %cst_15 [1] : vector<8x8xf32> to vector<8xf32>
    %29 = vector.shape_cast %28 : vector<8xf32> to vector<8x1xf32>
    %30 = arith.truncf %27 : vector<8x8xf32> to vector<8x8xbf16>
    %cst_16 = arith.constant dense<0.000000e+00> : vector<8x8xf32>
    %31 = tpu.matmul %30, %21, %cst_16 {dimension_numbers = #tpu.dot_dimension_numbers<[1], [0], [0], [1], [0, 0, 1, 1], [], []>} : vector<8x8xbf16>, vector<8x8xbf16>, vector<8x8xf32> -> vector<8x8xf32>
    %32 = tpu.reciprocal %29 {approx = true} : vector<8x1xf32> -> vector<8x1xf32>
    %33 = vector.broadcast %32 : vector<8x1xf32> to vector<8x8xf32>
    %34 = arith.mulf %31, %33 : vector<8x8xf32>
    %35 = arith.truncf %34 : vector<8x8xf32> to vector<8x8xbf16>
    %36 = vector.extract_strided_slice %16 {offsets = [0, 8], sizes = [8, 8], strides = [1, 1]} : vector<8x32xbf16> to vector<8x8xbf16>
    %37 = vector.extract_strided_slice %17 {offsets = [0, 8], sizes = [8, 8], strides = [1, 1]} : vector<8x32xbf16> to vector<8x8xbf16>
    %38 = vector.extract_strided_slice %18 {offsets = [0, 8], sizes = [8, 8], strides = [1, 1]} : vector<8x32xbf16> to vector<8x8xbf16>
    %cst_17 = arith.constant dense<0.000000e+00> : vector<8x8xf32>
    %39 = tpu.matmul %36, %37, %cst_17 {dimension_numbers = #tpu.dot_dimension_numbers<[1], [1], [0], [0], [0, 0, 1, 0], [], []>} : vector<8x8xbf16>, vector<8x8xbf16>, vector<8x8xf32> -> vector<8x8xf32>
    %cst_18 = arith.constant dense<0xFF800000> : vector<8xf32>
    %40 = vector.multi_reduction <maximumf>, %39, %cst_18 [1] : vector<8x8xf32> to vector<8xf32>
    %41 = vector.shape_cast %40 : vector<8xf32> to vector<8x1xf32>
    %42 = vector.broadcast %41 : vector<8x1xf32> to vector<8x8xf32>
    %43 = arith.subf %39, %42 : vector<8x8xf32>
    %44 = math.exp %43 : vector<8x8xf32>
    %cst_19 = arith.constant dense<0.000000e+00> : vector<8xf32>
    %45 = vector.multi_reduction <add>, %44, %cst_19 [1] : vector<8x8xf32> to vector<8xf32>
    %46 = vector.shape_cast %45 : vector<8xf32> to vector<8x1xf32>
    %47 = arith.truncf %44 : vector<8x8xf32> to vector<8x8xbf16>
    %cst_20 = arith.constant dense<0.000000e+00> : vector<8x8xf32>
    %48 = tpu.matmul %47, %38, %cst_20 {dimension_numbers = #tpu.dot_dimension_numbers<[1], [0], [0], [1], [0, 0, 1, 1], [], []>} : vector<8x8xbf16>, vector<8x8xbf16>, vector<8x8xf32> -> vector<8x8xf32>
    %49 = tpu.reciprocal %46 {approx = true} : vector<8x1xf32> -> vector<8x1xf32>
    %50 = vector.broadcast %49 : vector<8x1xf32> to vector<8x8xf32>
    %51 = arith.mulf %48, %50 : vector<8x8xf32>
    %52 = arith.truncf %51 : vector<8x8xf32> to vector<8x8xbf16>
    %53 = vector.extract_strided_slice %16 {offsets = [0, 16], sizes = [8, 8], strides = [1, 1]} : vector<8x32xbf16> to vector<8x8xbf16>
    %54 = vector.extract_strided_slice %17 {offsets = [0, 16], sizes = [8, 8], strides = [1, 1]} : vector<8x32xbf16> to vector<8x8xbf16>
    %55 = vector.extract_strided_slice %18 {offsets = [0, 16], sizes = [8, 8], strides = [1, 1]} : vector<8x32xbf16> to vector<8x8xbf16>
    %cst_21 = arith.constant dense<0.000000e+00> : vector<8x8xf32>
    %56 = tpu.matmul %53, %54, %cst_21 {dimension_numbers = #tpu.dot_dimension_numbers<[1], [1], [0], [0], [0, 0, 1, 0], [], []>} : vector<8x8xbf16>, vector<8x8xbf16>, vector<8x8xf32> -> vector<8x8xf32>
    %cst_22 = arith.constant dense<0xFF800000> : vector<8xf32>
    %57 = vector.multi_reduction <maximumf>, %56, %cst_22 [1] : vector<8x8xf32> to vector<8xf32>
    %58 = vector.shape_cast %57 : vector<8xf32> to vector<8x1xf32>
    %59 = vector.broadcast %58 : vector<8x1xf32> to vector<8x8xf32>
    %60 = arith.subf %56, %59 : vector<8x8xf32>
    %61 = math.exp %60 : vector<8x8xf32>
    %cst_23 = arith.constant dense<0.000000e+00> : vector<8xf32>
    %62 = vector.multi_reduction <add>, %61, %cst_23 [1] : vector<8x8xf32> to vector<8xf32>
    %63 = vector.shape_cast %62 : vector<8xf32> to vector<8x1xf32>
    %64 = arith.truncf %61 : vector<8x8xf32> to vector<8x8xbf16>
    %cst_24 = arith.constant dense<0.000000e+00> : vector<8x8xf32>
    %65 = tpu.matmul %64, %55, %cst_24 {dimension_numbers = #tpu.dot_dimension_numbers<[1], [0], [0], [1], [0, 0, 1, 1], [], []>} : vector<8x8xbf16>, vector<8x8xbf16>, vector<8x8xf32> -> vector<8x8xf32>
    %66 = tpu.reciprocal %63 {approx = true} : vector<8x1xf32> -> vector<8x1xf32>
    %67 = vector.broadcast %66 : vector<8x1xf32> to vector<8x8xf32>
    %68 = arith.mulf %65, %67 : vector<8x8xf32>
    %69 = arith.truncf %68 : vector<8x8xf32> to vector<8x8xbf16>
    %70 = vector.extract_strided_slice %16 {offsets = [0, 24], sizes = [8, 8], strides = [1, 1]} : vector<8x32xbf16> to vector<8x8xbf16>
    %71 = vector.extract_strided_slice %17 {offsets = [0, 24], sizes = [8, 8], strides = [1, 1]} : vector<8x32xbf16> to vector<8x8xbf16>
    %72 = vector.extract_strided_slice %18 {offsets = [0, 24], sizes = [8, 8], strides = [1, 1]} : vector<8x32xbf16> to vector<8x8xbf16>
    %cst_25 = arith.constant dense<0.000000e+00> : vector<8x8xf32>
    %73 = tpu.matmul %70, %71, %cst_25 {dimension_numbers = #tpu.dot_dimension_numbers<[1], [1], [0], [0], [0, 0, 1, 0], [], []>} : vector<8x8xbf16>, vector<8x8xbf16>, vector<8x8xf32> -> vector<8x8xf32>
    %cst_26 = arith.constant dense<0xFF800000> : vector<8xf32>
    %74 = vector.multi_reduction <maximumf>, %73, %cst_26 [1] : vector<8x8xf32> to vector<8xf32>
    %75 = vector.shape_cast %74 : vector<8xf32> to vector<8x1xf32>
    %76 = vector.broadcast %75 : vector<8x1xf32> to vector<8x8xf32>
    %77 = arith.subf %73, %76 : vector<8x8xf32>
    %78 = math.exp %77 : vector<8x8xf32>
    %cst_27 = arith.constant dense<0.000000e+00> : vector<8xf32>
    %79 = vector.multi_reduction <add>, %78, %cst_27 [1] : vector<8x8xf32> to vector<8xf32>
    %80 = vector.shape_cast %79 : vector<8xf32> to vector<8x1xf32>
    %81 = arith.truncf %78 : vector<8x8xf32> to vector<8x8xbf16>
    %cst_28 = arith.constant dense<0.000000e+00> : vector<8x8xf32>
    %82 = tpu.matmul %81, %72, %cst_28 {dimension_numbers = #tpu.dot_dimension_numbers<[1], [0], [0], [1], [0, 0, 1, 1], [], []>} : vector<8x8xbf16>, vector<8x8xbf16>, vector<8x8xf32> -> vector<8x8xf32>
    %83 = tpu.reciprocal %80 {approx = true} : vector<8x1xf32> -> vector<8x1xf32>
    %84 = vector.broadcast %83 : vector<8x1xf32> to vector<8x8xf32>
    %85 = arith.mulf %82, %84 : vector<8x8xf32>
    %86 = arith.truncf %85 : vector<8x8xf32> to vector<8x8xbf16>
    %87 = tpu.concatenate %35, %52, %69, %86 in 1 : vector<8x8xbf16>, vector<8x8xbf16>, vector<8x8xbf16>, vector<8x8xbf16> -> vector<8x32xbf16>
    %c0_29 = arith.constant 0 : index
    %c0_30 = arith.constant 0 : index
    %88 = vector.load %arg22[%c0_29, %c0_30] : memref<8x32xbf16, #tpu.memory_space<vmem>>, vector<8x32xbf16>
    tpu.vector_store %arg22[%c0_29, %c0_30], %87 {strides = array<i32>} : memref<8x32xbf16, #tpu.memory_space<vmem>>, vector<8x32xbf16>,
    %c0_31 = arith.constant 0 : index
    %c0_32 = arith.constant 0 : index
    %89 = vector.load %arg22[%c0_31, %c0_32] : memref<8x32xbf16, #tpu.memory_space<vmem>>, vector<8x32xbf16>
    %c0_33 = arith.constant 0 : index
    %c0_34 = arith.constant 0 : index
    %90 = vector.load %arg7[%c0_33, %c0_34] : memref<32x32xbf16, #tpu.memory_space<vmem>>, vector<32x32xbf16>
    %cst_35 = arith.constant dense<0.000000e+00> : vector<8x32xf32>
    %91 = tpu.matmul %89, %90, %cst_35 {dimension_numbers = #tpu.dot_dimension_numbers<[1], [0], [0], [1], [0, 0, 1, 1], [], []>} : vector<8x32xbf16>, vector<32x32xbf16>, vector<8x32xf32> -> vector<8x32xf32>
    %c0_36 = arith.constant 0 : index
    %c0_37 = arith.constant 0 : index
    %92 = vector.load %arg8[%c0_36, %c0_37] : memref<1x32xf32, #tpu.memory_space<vmem>>, vector<1x32xf32>
    %93 = vector.shape_cast %92 : vector<1x32xf32> to vector<32xf32>
    %94 = vector.shape_cast %93 : vector<32xf32> to vector<1x32xf32>
    %95 = vector.broadcast %94 : vector<1x32xf32> to vector<8x32xf32>
    %96 = arith.addf %91, %95 : vector<8x32xf32>
    %c0_38 = arith.constant 0 : index
    %97 = arith.index_cast %4 : i32 to index
    %c0_39 = arith.constant 0 : index
    %98 = vector.load %arg2[%c0_38, %97, %c0_39] : memref<1x8x32xf32, #tpu.memory_space<vmem>>, vector<1x8x32xf32>
    %99 = vector.shape_cast %98 : vector<1x8x32xf32> to vector<8x32xf32>
    %100 = arith.addf %99, %96 : vector<8x32xf32>
    %c0_40 = arith.constant 0 : index
    %c0_41 = arith.constant 0 : index
    %101 = vector.load %arg15[%c0_40, %c0_41] : memref<1x32xf32, #tpu.memory_space<vmem>>, vector<1x32xf32>
    %102 = vector.shape_cast %101 : vector<1x32xf32> to vector<32xf32>
    %c0_42 = arith.constant 0 : index
    %c0_43 = arith.constant 0 : index
    %103 = vector.load %arg16[%c0_42, %c0_43] : memref<1x32xf32, #tpu.memory_space<vmem>>, vector<1x32xf32>
    %104 = vector.shape_cast %103 : vector<1x32xf32> to vector<32xf32>
    %cst_44 = arith.constant dense<0.000000e+00> : vector<8xf32>
    %105 = vector.multi_reduction <add>, %100, %cst_44 [1] : vector<8x32xf32> to vector<8xf32>
    %106 = vector.shape_cast %105 : vector<8xf32> to vector<8x1xf32>
    %cst_45 = arith.constant 3.200000e+01 : f32
    %107 = vector.broadcast %cst_45 : f32 to vector<8x1xf32>
    %108 = arith.divf %106, %107 : vector<8x1xf32>
    %109 = vector.broadcast %108 : vector<8x1xf32> to vector<8x32xf32>
    %110 = arith.subf %100, %109 : vector<8x32xf32>
    %111 = arith.mulf %110, %110 : vector<8x32xf32>
    %cst_46 = arith.constant dense<0.000000e+00> : vector<8xf32>
    %112 = vector.multi_reduction <add>, %111, %cst_46 [1] : vector<8x32xf32> to vector<8xf32>
    %113 = vector.shape_cast %112 : vector<8xf32> to vector<8x1xf32>
    %cst_47 = arith.constant 3.200000e+01 : f32
    %114 = vector.broadcast %cst_47 : f32 to vector<8x1xf32>
    %115 = arith.divf %113, %114 : vector<8x1xf32>
    %116 = vector.broadcast %108 : vector<8x1xf32> to vector<8x32xf32>
    %117 = arith.subf %100, %116 : vector<8x32xf32>
    %cst_48 = arith.constant 9.99999974E-6 : f32
    %118 = vector.broadcast %cst_48 : f32 to vector<8x1xf32>
    %119 = arith.addf %115, %118 : vector<8x1xf32>
    %120 = math.rsqrt %119 : vector<8x1xf32>
    %121 = vector.broadcast %120 : vector<8x1xf32> to vector<8x32xf32>
    %122 = arith.mulf %117, %121 : vector<8x32xf32>
    %123 = vector.shape_cast %102 : vector<32xf32> to vector<1x32xf32>
    %124 = vector.broadcast %123 : vector<1x32xf32> to vector<8x32xf32>
    %125 = arith.mulf %122, %124 : vector<8x32xf32>
    %126 = vector.shape_cast %104 : vector<32xf32> to vector<1x32xf32>
    %127 = vector.broadcast %126 : vector<1x32xf32> to vector<8x32xf32>
    %128 = arith.addf %125, %127 : vector<8x32xf32>
    %129 = arith.truncf %128 : vector<8x32xf32> to vector<8x32xbf16>
    %c0_49 = arith.constant 0 : index
    %c0_50 = arith.constant 0 : index
    %130 = vector.load %arg9[%c0_49, %c0_50] : memref<32x64xbf16, #tpu.memory_space<vmem>>, vector<32x64xbf16>
    %cst_51 = arith.constant dense<0.000000e+00> : vector<8x64xf32>
    %131 = tpu.matmul %129, %130, %cst_51 {dimension_numbers = #tpu.dot_dimension_numbers<[1], [0], [0], [1], [0, 0, 1, 1], [], []>} : vector<8x32xbf16>, vector<32x64xbf16>, vector<8x64xf32> -> vector<8x64xf32>
    %c0_52 = arith.constant 0 : index
    %c0_53 = arith.constant 0 : index
    %132 = vector.load %arg10[%c0_52, %c0_53] : memref<1x64xf32, #tpu.memory_space<vmem>>, vector<1x64xf32>
    %133 = vector.shape_cast %132 : vector<1x64xf32> to vector<64xf32>
    %134 = vector.shape_cast %133 : vector<64xf32> to vector<1x64xf32>
    %135 = vector.broadcast %134 : vector<1x64xf32> to vector<8x64xf32>
    %136 = arith.addf %131, %135 : vector<8x64xf32>
    %cst_54 = arith.constant 0.000000e+00 : f32
    %137 = vector.broadcast %cst_54 : f32 to vector<8x64xf32>
    %138 = arith.maximumf %136, %137 : vector<8x64xf32>
    %139 = arith.truncf %138 : vector<8x64xf32> to vector<8x64xbf16>
    %c0_55 = arith.constant 0 : index
    %c0_56 = arith.constant 0 : index
    %140 = vector.load %arg11[%c0_55, %c0_56] : memref<64x32xbf16, #tpu.memory_space<vmem>>, vector<64x32xbf16>
    %cst_57 = arith.constant dense<0.000000e+00> : vector<8x32xf32>
    %141 = tpu.matmul %139, %140, %cst_57 {dimension_numbers = #tpu.dot_dimension_numbers<[1], [0], [0], [1], [0, 0, 1, 1], [], []>} : vector<8x64xbf16>, vector<64x32xbf16>, vector<8x32xf32> -> vector<8x32xf32>
    %c0_58 = arith.constant 0 : index
    %c0_59 = arith.constant 0 : index
    %142 = vector.load %arg12[%c0_58, %c0_59] : memref<1x32xf32, #tpu.memory_space<vmem>>, vector<1x32xf32>
    %143 = vector.shape_cast %142 : vector<1x32xf32> to vector<32xf32>
    %144 = vector.shape_cast %143 : vector<32xf32> to vector<1x32xf32>
    %145 = vector.broadcast %144 : vector<1x32xf32> to vector<8x32xf32>
    %146 = arith.addf %141, %145 : vector<8x32xf32>
    %147 = arith.addf %100, %146 : vector<8x32xf32>
    %c0_60 = arith.constant 0 : index
    %c0_61 = arith.constant 0 : index
    %c0_62 = arith.constant 0 : index
    %148 = vector.load %arg17[%c0_60, %c0_61, %c0_62] : memref<1x8x32xf32, #tpu.memory_space<vmem>>, vector<1x8x32xf32>
    %149 = vector.shape_cast %148 : vector<1x8x32xf32> to vector<8x32xf32>
    %150 = vector.shape_cast %147 : vector<8x32xf32> to vector<1x8x32xf32>
    tpu.vector_store %arg17[%c0_60, %c0_61, %c0_62], %150 {strides = array<i32>} : memref<1x8x32xf32, #tpu.memory_space<vmem>>, vector<1x8x32xf32>,
    return
  }
  func.func @transform_0(%arg0: i32, %arg1: i32) -> (i32, i32, i32) {
    %c0_i32 = arith.constant 0 : i32
    %c0_i32_0 = arith.constant 0 : i32
    %c0_i32_1 = arith.constant 0 : i32
    return %arg0, %c0_i32, %c0_i32_0 : i32, i32, i32
  }
  func.func @transform_1(%arg0: i32, %arg1: i32) -> (i32, i32) {
    %c0_i32 = arith.constant 0 : i32
    %c0_i32_0 = arith.constant 0 : i32
    %c0_i32_1 = arith.constant 0 : i32
    return %c0_i32, %c0_i32_0 : i32, i32
  }
  func.func @transform_2(%arg0: i32, %arg1: i32) -> (i32, i32) {
    %c0_i32 = arith.constant 0 : i32
    %c0_i32_0 = arith.constant 0 : i32
    %c0_i32_1 = arith.constant 0 : i32
    return %c0_i32, %c0_i32_0 : i32, i32
  }
  func.func @transform_3(%arg0: i32, %arg1: i32) -> (i32, i32) {
    %c0_i32 = arith.constant 0 : i32
    %c0_i32_0 = arith.constant 0 : i32
    %c0_i32_1 = arith.constant 0 : i32
    return %c0_i32, %c0_i32_0 : i32, i32
  }
  func.func @transform_4(%arg0: i32, %arg1: i32) -> (i32, i32) {
    %c0_i32 = arith.constant 0 : i32
    %c0_i32_0 = arith.constant 0 : i32
    %c0_i32_1 = arith.constant 0 : i32
    return %c0_i32, %c0_i32_0 : i32, i32
  }
  func.func @transform_5(%arg0: i32, %arg1: i32) -> (i32, i32) {
    %c0_i32 = arith.constant 0 : i32
    %c0_i32_0 = arith.constant 0 : i32
    %c0_i32_1 = arith.constant 0 : i32
    return %c0_i32, %c0_i32_0 : i32, i32
  }
  func.func @transform_6(%arg0: i32, %arg1: i32) -> (i32, i32) {
    %c0_i32 = arith.constant 0 : i32
    %c0_i32_0 = arith.constant 0 : i32
    %c0_i32_1 = arith.constant 0 : i32
    return %c0_i32, %c0_i32_0 : i32, i32
  }
  func.func @transform_7(%arg0: i32, %arg1: i32) -> (i32, i32) {
    %c0_i32 = arith.constant 0 : i32
    %c0_i32_0 = arith.constant 0 : i32
    %c0_i32_1 = arith.constant 0 : i32
    return %c0_i32, %c0_i32_0 : i32, i32
  }
  func.func @transform_8(%arg0: i32, %arg1: i32) -> (i32, i32) {
    %c0_i32 = arith.constant 0 : i32
    %c0_i32_0 = arith.constant 0 : i32
    %c0_i32_1 = arith.constant 0 : i32
    return %c0_i32, %c0_i32_0 : i32, i32
  }
  func.func @transform_9(%arg0: i32, %arg1: i32) -> (i32, i32) {
    %c0_i32 = arith.constant 0 : i32
    %c0_i32_0 = arith.constant 0 : i32
    %c0_i32_1 = arith.constant 0 : i32
    return %c0_i32, %c0_i32_0 : i32, i32
  }
  func.func @transform_10(%arg0: i32, %arg1: i32) -> (i32, i32) {
    %c0_i32 = arith.constant 0 : i32
    %c0_i32_0 = arith.constant 0 : i32
    %c0_i32_1 = arith.constant 0 : i32
    return %c0_i32, %c0_i32_0 : i32, i32
  }
  func.func @transform_11(%arg0: i32, %arg1: i32) -> (i32, i32) {
    %c0_i32 = arith.constant 0 : i32
    %c0_i32_0 = arith.constant 0 : i32
    %c0_i32_1 = arith.constant 0 : i32
    return %c0_i32, %c0_i32_0 : i32, i32
  }
  func.func @transform_12(%arg0: i32, %arg1: i32) -> (i32, i32) {
    %c0_i32 = arith.constant 0 : i32
    %c0_i32_0 = arith.constant 0 : i32
    %c0_i32_1 = arith.constant 0 : i32
    return %c0_i32, %c0_i32_0 : i32, i32
  }
  func.func @transform_13(%arg0: i32, %arg1: i32) -> (i32, i32) {
    %c0_i32 = arith.constant 0 : i32
    %c0_i32_0 = arith.constant 0 : i32
    %c0_i32_1 = arith.constant 0 : i32
    return %c0_i32, %c0_i32_0 : i32, i32
  }
  func.func @transform_14(%arg0: i32, %arg1: i32) -> (i32, i32) {
    %c0_i32 = arith.constant 0 : i32
    %c0_i32_0 = arith.constant 0 : i32
    %c0_i32_1 = arith.constant 0 : i32
    return %c0_i32, %c0_i32_0 : i32, i32
  }
  func.func @transform_15(%arg0: i32, %arg1: i32) -> (i32, i32, i32) {
    %c0_i32 = arith.constant 0 : i32
    %c0_i32_0 = arith.constant 0 : i32
    return %arg0, %arg1, %c0_i32 : i32, i32, i32
  }
}

</mosaic_0001>

<bundles_post_ra>
// kernel: tpu_custom_call.1
= control target key start
LH: loop header
LB: loop body
LE: loop exit
PB: predicated region body
PF: predicated region fallthrough
CT: control target
= control target key end

     0   :  { %s1905_s0 = inlined_call_operand.vmem [shape: f32[2,8,32], index: 0, kind: input, shape index: {}]   ;;  %s1906_s1 = inlined_call_operand.vmem [shape: bf16[32,32], index: 1, kind: input, shape index: {}]   ;;  %s1907_s2 = inlined_call_operand.vmem [shape: bf16[32,64], index: 2, kind: input, shape index: {}]   ;;  %s1908_s3 = inlined_call_operand.vmem [shape: f32[1,32], index: 3, kind: input, shape index: {}]   ;;  %s1909_s4 = inlined_call_operand.vmem [shape: f32[1,64], index: 4, kind: input, shape index: {}]   ;;  %s1910_s5 = inlined_call_operand.hbm [shape: bf16[32,32], index: 5, kind: input, shape index: {}]   ;;  %s1911_s6 = inlined_call_operand.vmem [shape: f32[1,32], index: 6, kind: input, shape index: {}]   ;;  %s1912_s7 = inlined_call_operand.hbm [shape: bf16[32,64], index: 7, kind: input, shape index: {}]   ;;  %s1913_s8 = inlined_call_operand.vmem [shape: f32[1,64], index: 8, kind: input, shape index: {}]   ;;  %s1914_s9 = inlined_call_operand.vmem [shape: bf16[64,32], index: 9, kind: input, shape index: {}]   ;;  %s1915_s10 = inlined_call_operand.vmem [shape: f32[1,32], index: 10, kind: input, shape index: {}]   ;;  %s1916_s11 = inlined_call_operand.vmem [shape: f32[1,32], index: 11, kind: input, shape index: {}]   ;;  %s1917_s12 = inlined_call_operand.vmem [shape: f32[1,32], index: 12, kind: input, shape index: {}]   ;;  %s1918_s13 = inlined_call_operand.vmem [shape: f32[1,32], index: 13, kind: input, shape index: {}]   ;;  %s1919_s14 = inlined_call_operand.vmem [shape: f32[1,32], index: 14, kind: input, shape index: {}]   ;;  %s1920_s15 = inlined_call_operand.hbm [shape: f32[2,8,32], index: 15, kind: output, shape index: {}]  }
   0x1   :  { %1930 = sst [smem:[#allocation24_spill]] %s1905_s0 }
   0x2   :  { %20 = vsyncpa [#allocation8], 0 }
   0x3   :  { %21 = vsyncpa [#allocation11], 0 }
   0x4   :  { %22 = vsyncpa [#allocation9], 0 }
   0x5   :  { %24 = vsyncpa [#allocation9 + $0x1], 0  ;;  %s1667_s18 = smov 0   ;;  %s1669_s19 = smov 0  }
   0x6   :  { %s1671_s20 = smov 0   ;;  %s1673_s21 = smov 0  }
   0x7   :  { %s1675_s22 = smov 0   ;;  %s1677_s23 = smov 0  }
   0x8 LB: > { %1931 = sst [smem:[#allocation16_spill]] %s1553_s18  ;;  %s1222_s24 = sadd.s32 4294967295, %s1573_s23   ;;  %s1573_s23 = sphi %s1677_s23, %s30_s23   ;;  %s1569_s22 = sphi %s1675_s22, %s1951_s22   ;;  %s1565_s21 = sphi %s1673_s21, %s1950_s21   ;;  %s1561_s20 = sphi %s1671_s20, %s1949_s20   ;;  %s1557_s19 = sphi %s1669_s19, %s1953_s19   ;;  %s1553_s18 = sphi %s1667_s18, %s1952_s18  }
   0x9   : > { %1932 = sst [smem:[#allocation17_spill]] %s1561_s20  ;;  %s1223_s25 = sadd.s32 4294967294, %s1573_s23  }
   0xa   : > { %1933 = sst [smem:[#allocation18_spill]] %s1569_s22  ;;  %s42_s26 = sadd.s32 1, %s1569_s22 }
   0xb   : > { %1934 = sst [smem:[#allocation19_spill]] %s1573_s23  ;;  %s371_s27 = sadd.s32 1, %s1561_s20 }
   0xc   : > { %p44_p0 = scmp.ge.s32.totalorder %s42_s26, 2  ;;  %p381_p1 = scmp.ne.s32.totalorder %s1561_s20, %s1557_s19 }
   0xd   : > { %p382_p2 = scmp.eq.s32.totalorder %s1222_s24, 1  ;;  %p387_p3 = scmp.ne.s32.totalorder %s1557_s19, %s1553_s18 }
   0xe   : > { %s1955_s26 = smov (%p44_p0, %s42_s26), 0  ;;  %p388_p5 = scmp.eq.s32.totalorder %s1223_s25, 1 }
   0xf   : > { %1935 = sst [smem:[#allocation20_spill]] %s1955_s26  ;;  %p1707_p4 = por %p382_p2, %p381_p1 }
  0x10   : > { %s366_s29 = ssub.s32 %s1569_s22, %s1955_s26  ;;  %p1224_p6 = scmp.ge.s32.totalorder %s1573_s23, 1 }
  0x11   : > { %s1936_s28 = scalar_select %p1707_p4, 1, 0 }
  0x12   : > { %p369_p7 = scmp.eq.s32.totalorder %s366_s29, 0  ;;  %p1714_p8 = por %p388_p5, %p387_p3 }
  0x13   : > { %1937 = sst [smem:[#allocation21_spill]] %s1936_s28  ;;  %p395_p9 = scmp.lt.s32.totalorder %s1573_s23, 3 }
  0x14   : > { %s1938_s30 = scalar_select %p1714_p8, 1, 0 }
  0x15   : > { %s1720_s16 = scalar_select %p369_p7, %s1561_s20, %s371_s27  }
  0x16   : > { %1939 = sst [smem:[#allocation22_spill]] %s1938_s30  ;;  %p1722_p10 = pnand %p1224_p6, %p395_p9 }
  0x17   : > { %1940 = sst [smem:[#allocation23_spill]] %s1720_s16  ;;  %p1726_p11 = scmp.eq.s32.totalorder %s1222_s24, 0 }
  0x18   : > { %s418_s29 = sshll.u32 %s1910_s5, 4  ;;  %p1320_p12 = pneg %p1722_p10  ;;  %s419_s29 = int_to_ptr.hbm [resolvable:$true] %s418_s29 }
  0x19   : > { %s1575_s22 = smov [#allocation7]   ;;  %s435_s24 = sshll.u32 %s1912_s7, 4  ;;  %s436_s24 = int_to_ptr.hbm [resolvable:$true] %s435_s24 }
  0x1a   : > { %s420_s27 = sshll.u32 %s1575_s22, 4  ;;  %p1321_p13 = pnand %p1726_p11, %p1320_p12  ;;  %s421_s27 = int_to_ptr.vmem [resolvable:$true] %s420_s27 }
  0x1b   : > { %s1576_s30 = smov 64   ;;  %s1577_s23 = smov 4  }
  0x1c   : > { %1323 = dma.hbm_to_vmem [thread:$0]  (!%p1321_p13), %s419_s29, 256, %s421_s27, [#allocation8], %s1576_s30, %s1576_s30, %s1577_s23  }
  0x1d   : > { %s1578_s28 = smov [#allocation10]   ;;  %481 = sbr.rel (%p1722_p10) target bundleno = 1975 (0x7b7), region = 80 }
  0x1e   : > { %s437_s26 = sshll.u32 %s1578_s28, 4  ;;  %s438_s26 = int_to_ptr.vmem [resolvable:$true] %s437_s26 }
  0x1f   : > { %1326 = dma.hbm_to_vmem [thread:$0]  (!%p1321_p13), %s436_s24, 256, %s438_s26, [#allocation11], %s1576_s30, %s1576_s30, %s1577_s23  }
  0x22   : > { %1540 = dma.done.wait (%p1726_p11), [#allocation8], 256  }
  0x23   : > { %1542 = vsyncadd (%p1726_p11), [#allocation8], 4294967040 }
  0x24   : > { %1544 = dma.done.wait (%p1726_p11), [#allocation11], 256  }
  0x25   : > { %1546 = vsyncadd (%p1726_p11), [#allocation11], 4294967040  ;;  %p534_p0 = scmp.lt.s32.totalorder %s1565_s21, 1  ;;  %s1943_s0 = sld [smem:[#allocation24_spill]]  ;;  %vm546_vm0 = vcmask 261120   ;;  %v1579_v2 = vmov 32.0  }
  0x26   : > { %1405 = vrcp.f32 %v1579_v2  ;;  %v1299_v14 = vld [vmem:[%s1907_s2 + $0x8] sm:$0xff]  ;;  %v1298_v15 = vld [vmem:[%s1907_s2] sm:$0xff]  ;;  %vm585_vm5 = vcmask 257024   ;;  %vm679_vm6 = vcmask 64512   ;;  %s1580_s25 = smov 112   ;;  %s1581_s29 = smov 120  }
  0x27   : > { %s535_s20 = scalar_select %p534_p0, %s1565_s21, 1  ;;  %616 = vmatpush.bf16.msra.mxu0 %v1299_v14  ;;  %v1301_v16 = vld [vmem:[%s1906_s1 + $0x8] sm:$0xff]  ;;  %v1300_v18 = vld [vmem:[%s1906_s1] sm:$0xff]  ;;  %vm712_vm7 = vcmask 1043456   ;;  %vm930_vm8 = vcmask 130048   ;;  %vm933_vm9 = vcmask 195584  }
  0x28   : > { %666 = vmatpush.bf16.msra.mxu1 %v1301_v16  ;;  %v1396_v27 = vld [vmem:[%s1916_s11] ss:$0 sm:$0xff]  ;;  %s1582_s27 = smov 104   ;;  %s1583_s24 = smov 96   ;;  %vm1092_vm13 = vcmask 523264  }
  0x29   : > { %s1232_s22 = sshll.u32 %s535_s20, 3  ;;  %v1397_v30 = vld [vmem:[%s1917_s12] ss:$0 sm:$0xff]  ;;  %s1584_s26 = smov 16  }
  0x2a   : > { %v1398_v35 = vld [vmem:[%s1909_s4] ss:$0 sm:$0xff]  ;;  %s1585_s20 = smov 8   ;;  %s531_s18 = sand.u32 1, %s1557_s19  }
  0x2b   : > { %s537_s30 = scalar_lea.vmem %s1943_s0, %s1232_s22  ;;  %617 = vmatpush.bf16.msra.mxu0 %v1298_v15  ;;  %v1399_v39 = vld [vmem:[%s1908_s3] ss:$0 sm:$0xff]  ;;  %s1586_s22 = smov 24  }
  0x2c   : > { %v1755_v0 = vld [vmem:[%s537_s30] sm:$0xff]  ;;  %v1406_v3 = vpop.eup %1405  ;;  %667 = vmatpush.bf16.msra.mxu1 %v1300_v18  ;;  %s1231_s16 = sshll.u32 %s531_s18, 3  ;;  %s1295_s17 = sshll.u32 %s1565_s21, 3 }
  0x2d   : > { %v547_v1 = vsel %vm546_vm0, %v1755_v0, 0.0  ;;  %v551_v4 = vmul.f32 32.0, %v1406_v3  ;;  %vm555_vm1 = vweird.f32 %v1406_v3  ;;  %s1112_s21 = scalar_lea.sflag [#allocation9], %s531_s18 }
  0x2e   : > { %548 = vadd.xlane.f32.xlu0 %v547_v1 }
  0x2f   : > { %v552_v5 = vsub.f32 1.0, %v551_v4 }
  0x31   : > { %v553_v6 = vmul.f32 %v1406_v3, %v552_v5 }
  0x33   : > { %v554_v7 = vadd.f32 %v1406_v3, %v553_v6 }
  0x35   : > { %v1759_v8 = vsel %vm555_vm1, %v1406_v3, %v554_v7 }
  0xa1   : > { %v549_v9 = vpop.xlane.xlu0 %548 }
  0xa2   : > { %v557_v10 = vmul.f32 %v1759_v8, %v549_v9 }
  0xa4   : > { %v558_v11 = vsub.f32 %v1755_v0, %v557_v10 }
  0xa6   : > { %v559_v12 = vmul.f32 %v558_v11, %v558_v11 }
  0xa8   : > { %v560_v13 = vsel %vm546_vm0, %v559_v12, 0.0 }
  0xa9   : > { %561 = vadd.xlane.f32.xlu0 %v560_v13 }
 0x11c   : > { %v562_v17 = vpop.xlane.xlu0 %561 }
 0x11d   : > { %v563_v19 = vmul.f32 %v562_v17, %v1759_v8 }
 0x11f   : > { %v564_v20 = vadd.f32 1e-05, %v563_v19 }
 0x121   : > { %1407 = vrsqrt.f32 %v564_v20  ;;  %vm571_vm3 = vweird.f32 %v564_v20 }
 0x127   : > { %v1408_v21 = vpop.eup %1407 }
 0x128   : > { %v566_v22 = vmul.f32 %v1408_v21, %v564_v20  ;;  %vm572_vm2 = vweird.f32 %v1408_v21 }
 0x129   : > { %vm573_vm4 = vmor %vm571_vm3, %vm572_vm2 }
 0x12a   : > { %v567_v23 = vmul.f32 %v1408_v21, %v566_v22 }
 0x12c   : > { %v568_v24 = vmul.f32 0.5, %v567_v23 }
 0x12e   : > { %v569_v25 = vsub.f32 1.5, %v568_v24 }
 0x130   : > { %v570_v26 = vmul.f32 %v1408_v21, %v569_v25 }
 0x132   : > { %v574_v28 = vsel %vm573_vm4, %v1408_v21, %v570_v26 }
 0x133   : > { %v575_v29 = vmul.f32 %v574_v28, %v558_v11 }
 0x135   : > { %v579_v31 = vmul.f32 %v1396_v27, %v575_v29 }
 0x137   : > { %v583_v32 = vadd.f32 %v1397_v30, %v579_v31 }
 0x139   : > { %v584_v33 = vpack.c.bf16 %v583_v32, %v583_v32 }
 0x13b   : > { %586 = vst.msk [vmem:[#allocation2] sm:$0xf] %vm585_vm5, %v584_v33  ;;  %1241 = vmatmul.msk.bf16.vlgmr.msra.gmra.mxu0 %vm546_vm0, %v584_v33 }
 0x142   : > { %v635_v34 = vld [vmem:[#allocation2] sm:$0xf] }
 0x143   : > { %1250 = vmatmul.msk.bf16.vlgmr.msra.gmra.mxu1 %vm546_vm0, %v635_v34 }
 0x1b8   : > { %v619_v36 = vpop.f32.mrf.mxu0 }
 0x1b9   : > { %v620_v37 = vadd.f32 %v1398_v35, %v619_v36 }
 0x1bb   : > { %v623_v38 = vpack.c.bf16 %v620_v37, %v620_v37 }
 0x1bd   : > { %624 = vst.msk [vmem:[#allocation3] sm:$0xf] %vm585_vm5, %v623_v38 }
 0x1c0   : > { %v621_v40 = vpop.f32.mrf.mxu0  ;;  %v669_v41 = vpop.f32.mrf.mxu1 }
 0x1c1   : > { %v670_v42 = vadd.f32 %v1399_v39, %v669_v41 }
 0x1c3   : > { %v673_v43 = vpack.c.bf16 %v670_v42, %v670_v42 }
 0x1c4   : > { %v677_v44 = vld [vmem:[#allocation3] sm:$0xf] }
 0x1c5   : > { %675 = vst.msk [vmem:[#allocation5] sm:$0xf] %vm585_vm5, %v673_v43  ;;  %v684_v45 = vsel %vm679_vm6, %v677_v44, 0  ;;  %v738_v46 = vunpack.c.l.b16 %v677_v44 }
 0x1c6   : > { %693 = vmatpush.bf16.xpose.msra.mxu2 %v684_v45 }
 0x1c7   : > { %v739_v47 = vpack.c.b16 %v738_v46, %v738_v46 }
 0x1c8   : > { %v671_v48 = vpop.f32.mrf.mxu1 }
 0x1c9   : > { %800 = vrot.lane.b32.xlu0 %v739_v47, %s1580_s25  ;;  %740 = vrot.lane.b32.xlu2 %v739_v47, %s1581_s29 }
 0x1cc   : > { %v676_v49 = vld [vmem:[#allocation5] sm:$0xf] }
 0x1cd   : > { %1251 = vmatmul.msk.bf16.vlgmr.msra.gmra.mxu2 %vm679_vm6, %v676_v49  ;;  %v733_v50 = vunpack.c.l.b16 %v676_v49 }
 0x1cf   : > { %v734_v51 = vpack.c.b16 %v733_v50, %v733_v50 }
 0x1d1   : > { %735 = vrot.lane.b32.xlu2 %v734_v51, %s1581_s29 }
 0x1d9   : > { %857 = vrot.lane.b32.xlu2 %v739_v47, %s1582_s27 }
 0x1e1   : > { %798 = vrot.lane.b32.xlu2 %v734_v51, %s1580_s25 }
 0x1e9   : > { %855 = vrot.lane.b32.xlu2 %v734_v51, %s1582_s27 }
 0x223   : > { %v741_v52 = vpop.permute.xlu2 %740 }
 0x224   : > { %v746_v10 = vsel %vm679_vm6, %v741_v52, 0 }
 0x22b   : > { %v736_v53 = vpop.permute.xlu2 %735 }
 0x233   : > { %v858_v54 = vpop.permute.xlu2 %857 }
 0x234   : > { %v863_v13 = vsel %vm679_vm6, %v858_v54, 0 }
 0x23b   : > { %v801_v55 = vpop.permute.xlu0 %800  ;;  %v799_v57 = vpop.permute.xlu2 %798 }
 0x23c   : > { %v806_v56 = vsel %vm679_vm6, %v801_v55, 0 }
 0x23d   : > { %815 = vmatpush.bf16.xpose.msrb.mxu1 %v806_v56 }
 0x243   : > { %v856_v14 = vpop.permute.xlu2 %855 }
 0x244   : > { %1255 = vmatmul.msk.bf16.vlgmr.msrb.gmra.mxu1 %vm679_vm6, %v799_v57 }
 0x250   : > { %v695_v58 = vpop.f32.mrf.mxu2 }
 0x251   : > { %v699_v59 = vsel %vm679_vm6, %v695_v58, -inf }
 0x252   : > { %700 = vmax.xlane.f32.xlu1 %v699_v59 }
 0x258   : > { %v697_v60 = vpop.f32.mrf.mxu2 }
 0x26b   : > { %626 = vrot.lane.b32.xlu1 %v623_v38, %s1583_s24 }
 0x2c1   : > { %v817_v61 = vpop.f32.mrf.mxu1 }
 0x2c2   : > { %v821_v62 = vsel %vm679_vm6, %v817_v61, -inf }
 0x2c3   : > { %822 = vmax.xlane.f32.xlu0 %v821_v62 }
 0x2c5   : > { %v701_v1 = vpop.xlane.xlu1 %700 }
 0x2c6   : > { %v702_v2 = vsub.f32 %v695_v58, %v701_v1 }
 0x2c8   : > { %v703_v3 = vmul.f32 1.442695, %v702_v2 }
 0x2c9   : > { %v819_v63 = vpop.f32.mrf.mxu1 }
 0x2ca   : > { %1409 = vpow2.f32 %v703_v3 }
 0x2d0   : > { %v1410_v6 = vpop.eup %1409 }
 0x2d1   : > { %v708_v12 = vpack.c.bf16 %v1410_v6, %v1410_v6  ;;  %v705_v32 = vsel %vm679_vm6, %v1410_v6, 0.0 }
 0x2dd   : > { %v627_v4 = vpop.permute.xlu1 %626 }
 0x2de   : > { %629 = vst.msk [vmem:[#allocation4] sm:$0xf] %vm585_vm5, %v627_v4 }
 0x2e5   : > { %v678_v5 = vld [vmem:[#allocation4] sm:$0xf] }
 0x2e6   : > { %v714_v7 = vsel %vm712_vm7, %v678_v5, 0  ;;  %v772_v9 = vunpack.c.l.b16 %v678_v5 }
 0x2e7   : > { %723 = vmatpush.bf16.msra.mxu3 %v714_v7 }
 0x2e8   : > { %v773_v11 = vpack.c.b16 %v772_v9, %v772_v9 }
 0x2ea   : > { %888 = vrot.lane.b32.xlu0 %v773_v11, %s1582_s27  ;;  %774 = vrot.lane.b32.xlu2 %v773_v11, %s1581_s29 }
 0x2eb   : > { %755 = vmatpush.bf16.xpose.msrb.mxu3 %v746_v10  ;;  %v1303_v10 = vld [vmem:[#allocation7 + $0x8] sm:$0xff] }
 0x2ec   : > { %1252 = vmatmul.msk.bf16.vlgmr.msra.gmra.mxu3 %vm679_vm6, %v708_v12  ;;  %968 = vmatpush.bf16.msra.mxu1 %v1303_v10 }
 0x2f3   : > { %872 = vmatpush.bf16.xpose.msra.mxu3 %v863_v13 }
 0x2fc   : > { %1253 = vmatmul.msk.bf16.vlgmr.msrb.gmra.mxu3 %vm679_vm6, %v736_v53 }
 0x30c   : > { %1257 = vmatmul.msk.bf16.vlgmr.msra.gmra.mxu3 %vm679_vm6, %v856_v14 }
 0x336   : > { %v823_v17 = vpop.xlane.xlu0 %822 }
 0x337   : > { %v824_v24 = vsub.f32 %v817_v61, %v823_v17 }
 0x339   : > { %v825_v26 = vmul.f32 1.442695, %v824_v24  ;;  %v1400_v24 = vld [vmem:[%s1911_s6] ss:$0 sm:$0xff] }
 0x33b   : > { %1411 = vpow2.f32 %v825_v26 }
 0x341   : > { %v1412_v29 = vpop.eup %1411 }
 0x342   : > { %v827_v31 = vsel %vm679_vm6, %v1412_v29, 0.0  ;;  %v830_v45 = vpack.c.bf16 %v1412_v29, %v1412_v29 }
 0x344   : > { %v775_v15 = vpop.permute.xlu2 %774 }
 0x345   : > { %v780_v16 = vsel %vm712_vm7, %v775_v15, 0 }
 0x346   : > { %789 = vmatpush.bf16.msrb.mxu0 %v780_v16 }
 0x35c   : > { %v889_v18 = vpop.permute.xlu0 %888 }
 0x35d   : > { %v894_v19 = vsel %vm712_vm7, %v889_v18, 0 }
 0x35e   : > { %903 = vmatpush.bf16.msra.mxu0 %v894_v19 }
 0x36f   : > { %v1817_v20 = vpop.f32.mrf.mxu3 }
 0x377   : > { %v727_v21 = vpop.f32.mrf.mxu3 }
 0x37f   : > { %v757_v22 = vpop.f32.mrf.mxu3 }
 0x380   : > { %v761_v23 = vsel %vm679_vm6, %v757_v22, -inf }
 0x381   : > { %762 = vmax.xlane.f32.xlu1 %v761_v23 }
 0x387   : > { %v759_v25 = vpop.f32.mrf.mxu3 }
 0x38f   : > { %v874_v27 = vpop.f32.mrf.mxu3 }
 0x390   : > { %v878_v28 = vsel %vm679_vm6, %v874_v27, -inf }
 0x391   : > { %879 = vmax.xlane.f32.xlu2 %v878_v28 }
 0x397   : > { %v876_v30 = vpop.f32.mrf.mxu3 }
 0x399   : > { %828 = vadd.xlane.f32.xlu2 %v827_v31 }
 0x39a   : > { %831 = vrot.lane.b32.xlu1 %v773_v11, %s1580_s25  ;;  %v1302_v11 = vld [vmem:[#allocation7] sm:$0xff] }
 0x39b   : > { %969 = vmatpush.bf16.msra.mxu1 %v1302_v11 }
 0x3c4   : > { %706 = vadd.xlane.f32.xlu1 %v705_v32 }
 0x3f4   : > { %v763_v33 = vpop.xlane.xlu1 %762 }
 0x3f5   : > { %v764_v34 = vsub.f32 %v757_v22, %v763_v33 }
 0x3f7   : > { %v765_v35 = vmul.f32 1.442695, %v764_v34  ;;  %v1305_v34 = vld [vmem:[#allocation10 + $0x8] sm:$0xff] }
 0x3f9   : > { %1413 = vpow2.f32 %v765_v35  ;;  %v1304_v35 = vld [vmem:[#allocation10] sm:$0xff] }
 0x3ff   : > { %v1414_v36 = vpop.eup %1413 }
 0x400   : > { %v767_v37 = vsel %vm679_vm6, %v1414_v36, 0.0  ;;  %v770_v38 = vpack.c.bf16 %v1414_v36, %v1414_v36 }
 0x401   : > { %768 = vadd.xlane.f32.xlu2 %v767_v37 }
 0x402   : > { %1254 = vmatmul.msk.bf16.vlgmr.msrb.gmra.mxu0 %vm679_vm6, %v770_v38  ;;  %v1308_v38 = vld [vmem:[%s1914_s9 + $0x10] sm:$0xff] }
 0x404   : > { %v880_v39 = vpop.xlane.xlu2 %879 }
 0x405   : > { %v881_v40 = vsub.f32 %v874_v27, %v880_v39 }
 0x407   : > { %v882_v41 = vmul.f32 1.442695, %v881_v40 }
 0x409   : > { %1415 = vpow2.f32 %v882_v41 }
 0x40c   : > { %v832_v42 = vpop.permute.xlu1 %831  ;;  %v829_v49 = vpop.xlane.xlu2 %828 }
 0x40d   : > { %v837_v43 = vsel %vm712_vm7, %v832_v42, 0  ;;  %1417 = vrcp.f32 %v829_v49 }
 0x40e   : > { %846 = vmatpush.bf16.msrb.mxu2 %v837_v43 }
 0x40f   : > { %v1416_v44 = vpop.eup %1415 }
 0x410   : > { %v887_v46 = vpack.c.bf16 %v1416_v44, %v1416_v44  ;;  %v884_v47 = vsel %vm679_vm6, %v1416_v44, 0.0 }
 0x411   : > { %1256 = vmatmul.msk.bf16.vlgmr.msrb.gmra.mxu2 %vm679_vm6, %v830_v45  ;;  %885 = vadd.xlane.f32.xlu0 %v884_v47 }
 0x412   : > { %1258 = vmatmul.msk.bf16.vlgmr.msra.gmra.mxu0 %vm679_vm6, %v887_v46  ;;  %1047 = vmatpush.bf16.msra.mxu2 %v1305_v34 }
 0x413   : > { %v1418_v53 = vpop.eup %1417 }
 0x416   : > { %1048 = vmatpush.bf16.msra.mxu2 %v1304_v35 }
 0x437   : > { %v707_v12 = vpop.xlane.xlu1 %706 }
 0x474   : > { %v769_v51 = vpop.xlane.xlu2 %768 }
 0x475   : > { %1419 = vrcp.f32 %v769_v51 }
 0x47b   : > { %v1420_v57 = vpop.eup %1419 }
 0x47f   : > { %v791_v48 = vpop.f32.mrf.mxu0 }
 0x480   : > { %v796_v58 = vmul.f32 %v1420_v57, %v791_v48  ;;  %v1402_v48 = vld [vmem:[%s1919_s14] ss:$0 sm:$0xff] }
 0x482   : > { %v797_v62 = vpack.c.bf16 %v796_v58, %v796_v58 }
 0x484   : > { %v886_v55 = vpop.xlane.xlu0 %885  ;;  %v913_v3 = vunpack.c.l.b16 %v797_v62 }
 0x485   : > { %1421 = vrcp.f32 %v886_v55 }
 0x486   : > { %v914_v5 = vpack.c.b16 %v913_v3, %v913_v3  ;;  %1423 = vrcp.f32 %v707_v12 }
 0x487   : > { %v793_v50 = vpop.f32.mrf.mxu0 }
 0x48b   : > { %v1422_v2 = vpop.eup %1421 }
 0x48c   : > { %v1424_v14 = vpop.eup %1423 }
 0x48d   : > { %v730_v15 = vmul.f32 %v1424_v14, %v1817_v20 }
 0x48f   : > { %v905_v52 = vpop.f32.mrf.mxu0  ;;  %v731_v17 = vpack.c.bf16 %v730_v15, %v730_v15 }
 0x490   : > { %v910_v4 = vmul.f32 %v1422_v2, %v905_v52  ;;  %v1307_v52 = vld [vmem:[%s1914_s9 + $0x8] sm:$0xff] }
 0x492   : > { %v911_v6 = vpack.c.bf16 %v910_v4, %v910_v4 }
 0x494   : > { %v848_v54 = vpop.f32.mrf.mxu2  ;;  %v923_v7 = vunpack.c.l.b16 %v911_v6 }
 0x495   : > { %v853_v56 = vmul.f32 %v1418_v53, %v848_v54  ;;  %v1306_v53 = vld [vmem:[%s1914_s9] sm:$0xff] }
 0x496   : > { %v924_v9 = vpack.c.b16 %v923_v7, %v923_v7  ;;  %v1403_v54 = vld [vmem:[%s1913_s8] ss:$0 sm:$0xff] }
 0x497   : > { %v854_v59 = vpack.c.bf16 %v853_v56, %v853_v56  ;;  %v907_v60 = vpop.f32.mrf.mxu0 }
 0x498   : > { %v1404_v60 = vld [vmem:[%s1915_s10] ss:$0 sm:$0xff] }
 0x499   : > { %v918_v61 = vunpack.c.l.b16 %v854_v59 }
 0x49b   : > { %v919_v63 = vpack.c.b16 %v918_v61, %v918_v61 }
 0x49c   : > { %v850_v1 = vpop.f32.mrf.mxu2 }
 0x49d   : > { %920 = vrot.lane.b32.xlu2 %v919_v63, %s1584_s26 }
 0x4a5   : > { %915 = vrot.lane.b32.xlu2 %v914_v5, %s1585_s20  ;;  %s1123_s20 = scalar_lea.hbm %s1920_s15, %s1295_s17 }
 0x4a6   : > { %s1127_s28 = sshll.u32 %s1123_s20, 4  ;;  %s1128_s28 = int_to_ptr.hbm [resolvable:$true] %s1127_s28 }
 0x4a7   : > { %s1501_s30 = sshra.s32 %s1128_s28, 4  ;;  %s1502_s30 = int_to_ptr.hbm [resolvable:$true] %s1501_s30 }
 0x4a8   : > { %s1503_s25 = scalar_lea.hbm %s1502_s30, 8  ;;  %p1508_p5 = scmp.lt.s32.totalorder %s1502_s30, %s1920_s15 }
 0x4a9   : > { %p1504_p1 = scmp.ne.s32.totalorder %s1502_s30, %s1503_s25 }
 0x4ab   : > { %p1505_p2 = pnand %p1504_p1, %p1707_p4 }
 0x4ad   : > { %925 = vrot.lane.b32.xlu2 %v924_v9, %s1586_s22  ;;  %s533_s22 = scalar_lea.vmem [#allocation12], %s1231_s16  ;;  %p1506_p3 = pneg %p1505_p2 }
 0x4ae   : > { %s1125_s23 = sshll.u32 %s533_s22, 4  ;;  %s1507_s16 = scalar_lea.hbm %s1920_s15, 16  ;;  %s1126_s23 = int_to_ptr.vmem [resolvable:$true] %s1125_s23 }
 0x4af   : > { %p1509_p6 = scmp.lt.s32.totalorder %s1507_s16, %s1503_s25 }
 0x4b1   : > { %p1510_p7 = por %p1509_p6, %p1508_p5 }
 0x4b3   : > { %p1511_p9 = pnand %p1510_p7, %p1506_p3 }
 0x4f7   : > { %v921_v13 = vpop.permute.xlu2 %920 }
 0x4ff   : > { %v916_v16 = vpop.permute.xlu2 %915 }
 0x500   : > { %v929_v18 = vsel %vm679_vm6, %v731_v17, %v916_v16 }
 0x501   : > { %v932_v19 = vsel %vm930_vm8, %v929_v18, %v921_v13 }
 0x507   : > { %v926_v21 = vpop.permute.xlu2 %925 }
 0x508   : > { %v935_v22 = vsel %vm933_vm9, %v932_v19, %v926_v21 }
 0x509   : > { %937 = vst.msk [vmem:[#allocation6] sm:$0xf] %vm585_vm5, %v935_v22 }
 0x510   : > { %v938_v23 = vld [vmem:[#allocation6] sm:$0xf] }
 0x511   : > { %1267 = vmatmul.msk.bf16.vlgmr.msra.gmra.mxu1 %vm546_vm0, %v938_v23 }
 0x58e   : > { %v971_v25 = vpop.f32.mrf.mxu1 }
 0x58f   : > { %v972_v20 = vadd.f32 %v1400_v24, %v971_v25 }
 0x591   : > { %v977_v26 = vadd.f32 %v972_v20, %v1755_v0  ;;  %v1309_v0 = vld [vmem:[%s1914_s9 + $0x18] sm:$0xff] }
 0x592   : > { %1100 = vmatpush.bf16.msrb.mxu3 %v1309_v0 }
 0x593   : > { %v980_v27 = vsel %vm546_vm0, %v977_v26, 0.0 }
 0x594   : > { %981 = vadd.xlane.f32.xlu0 %v980_v27 }
 0x596   : > { %v973_v28 = vpop.f32.mrf.mxu1  ;;  %1101 = vmatpush.bf16.msrb.mxu3 %v1308_v38 }
 0x59a   : > { %1102 = vmatpush.bf16.msrb.mxu3 %v1307_v52 }
 0x59e   : > { %1103 = vmatpush.bf16.msrb.mxu3 %v1306_v53 }
 0x607   : > { %v982_v29 = vpop.xlane.xlu0 %981 }
 0x608   : > { %v990_v30 = vmul.f32 %v982_v29, %v1759_v8 }
 0x60a   : > { %v991_v31 = vsub.f32 %v977_v26, %v990_v30 }
 0x60c   : > { %v992_v32 = vmul.f32 %v991_v31, %v991_v31 }
 0x60e   : > { %v993_v33 = vsel %vm546_vm0, %v992_v32, 0.0 }
 0x60f   : > { %994 = vadd.xlane.f32.xlu1 %v993_v33 }
 0x682   : > { %v995_v36 = vpop.xlane.xlu1 %994 }
 0x683   : > { %v996_v37 = vmul.f32 %v995_v36, %v1759_v8  ;;  %v1401_v8 = vld [vmem:[%s1918_s13] ss:$0 sm:$0xff] }
 0x685   : > { %v997_v39 = vadd.f32 1e-05, %v996_v37 }
 0x687   : > { %1425 = vrsqrt.f32 %v997_v39  ;;  %vm1004_vm11 = vweird.f32 %v997_v39 }
 0x68d   : > { %v1426_v40 = vpop.eup %1425 }
 0x68e   : > { %v999_v41 = vmul.f32 %v1426_v40, %v997_v39  ;;  %vm1005_vm10 = vweird.f32 %v1426_v40 }
 0x68f   : > { %vm1006_vm12 = vmor %vm1004_vm11, %vm1005_vm10 }
 0x690   : > { %v1000_v42 = vmul.f32 %v1426_v40, %v999_v41 }
 0x692   : > { %v1001_v43 = vmul.f32 0.5, %v1000_v42 }
 0x694   : > { %v1002_v44 = vsub.f32 1.5, %v1001_v43 }
 0x696   : > { %v1003_v45 = vmul.f32 %v1426_v40, %v1002_v44 }
 0x698   : > { %v1007_v46 = vsel %vm1006_vm12, %v1426_v40, %v1003_v45 }
 0x699   : > { %v1008_v47 = vmul.f32 %v1007_v46, %v991_v31 }
 0x69b   : > { %v1012_v49 = vmul.f32 %v1401_v8, %v1008_v47 }
 0x69d   : > { %v1016_v50 = vadd.f32 %v1402_v48, %v1012_v49 }
 0x69f   : > { %v1017_v51 = vpack.c.bf16 %v1016_v50, %v1016_v50 }
 0x6a1   : > { %1276 = vmatmul.msk.bf16.vlgmr.msra.gmra.mxu2 %vm546_vm0, %v1017_v51 }
 0x724   : > { %v1050_v55 = vpop.f32.mrf.mxu2 }
 0x725   : > { %v1051_v56 = vadd.f32 %v1403_v54, %v1050_v55 }
 0x727   : > { %v1054_v57 = vmax.f32 %v1051_v56, 0.0 }
 0x729   : > { %v1055_v58 = vpack.c.bf16 %v1054_v57, %v1054_v57 }
 0x72b   : > { %1293 = vmatmul.msk.bf16.vlgmr.msrb.gmra.mxu3 %vm1092_vm13, %v1055_v58 }
 0x72c   : > { %v1052_v59 = vpop.f32.mrf.mxu2 }
 0x7ae   : > { %v1105_v61 = vpop.f32.mrf.mxu3 }
 0x7af   : > { %v1106_v62 = vadd.f32 %v1404_v60, %v1105_v61 }
 0x7b1   : > { %v1109_v63 = vadd.f32 %v1106_v62, %v977_v26 }
 0x7b3   : > { %1110 = vst.msk [vmem:[%s533_s22] sm:$0xff] %vm546_vm0, %v1109_v63 }
 0x7b4   : > { %1514 = shalt.err (!%p1511_p9)
}
 0x7b5   : > { %1318 = dma.vmem_to_hbm [thread:$0]  (%p1707_p4), %s1126_s23, 128, %s1128_s28, %s1112_s21  }
 0x7b6   : > { %v1107_v1 = vpop.f32.mrf.mxu3 }
 0x7b7 PF: > { %s1945_s18 = sld [smem:[#allocation19_spill]] }
 0x7b8   : > { %s1946_s20 = sld [smem:[#allocation16_spill]] }
 0x7bd   : > { %p1335_p10 = scmp.ge.s32.totalorder %s1945_s18, 2 }
 0x7be   : > { %s1139_s0 = sand.u32 1, %s1946_s20  }
 0x7bf   : > { %p1328_p11 = pnand %p1335_p10, %p1714_p8  ;;  %s1140_s29 = scalar_lea.sflag [#allocation9], %s1139_s0 }
 0x7c1   : > { %p1329_p12 = pneg %p1328_p11 }
 0x7c3   : > { %1548 = dma.done.wait (%p1329_p12), %s1140_s29, 128  }
 0x7c4   : > { %1550 = vsyncadd (%p1329_p12), %s1140_s29, 4294967168  ;;  %s30_s23 = sadd.s32 1, %s1945_s18   ;;  %s1948_s30 = sld [smem:[#allocation17_spill]] }
 0x7c5   : > { %p27_p13 = scmp.ge.s32.totalorder %s30_s23, 4   ;;  %s1949_s20 = sld [smem:[#allocation23_spill]] }
 0x7c6   : > { %s1950_s21 = sld [smem:[#allocation18_spill]]  ;;  %s1952_s18 = smov %s1557_s19 }
 0x7c7   : > { %s1951_s22 = sld [smem:[#allocation20_spill]]  ;;  %29 = sbr.rel (!%p27_p13) target bundleno = 8 (0x8), region = 130 }
 0x7ca   : > { %s1953_s19 = smov %s1948_s30 }
 0x7cc   :  { %1146 = vsyncpa [#allocation8], 1 }
 0x7cd   :  { %1148 = vsyncpa [#allocation8 + $0x1], 1 }
 0x7ce   :  { %1149 = vsyncpa [#allocation11], 1 }
 0x7cf   :  { %1150 = vsyncpa [#allocation9], 1 }
 0x7d0   :  { %1152 = vsyncpa [#allocation9 + $0x1], 1 }

</bundles_post_ra>
